<compile_context>
chip_gen: v5e
topology: v5e:2x2
jax: 0.10.0
libtpu: 0.0.40
codegen_flags: <defaults>
</compile_context>

<pallas_src>
import functools
import math

import jax
import jax.numpy as jnp
from jax.experimental import pallas as pl
from jax.experimental.pallas import tpu as pltpu

SQRT2 = math.sqrt(2.0)

_LANE_CHOICES = (1024, 512, 256, 128)       # lane-dense last-dim candidates
_TARGET_BLOCK_BYTES = 8 * 1024 * 1024       # ~8 MiB per pipelined block
_VMEM_LIMIT_BYTES = 48 * 1024 * 1024        # 2 bufs x (in+out) x 8 MiB + headroom
_ROW_ALIGN = 32                             # sublane packing safe down to int8/fp8
_MIN_SPLIT_BYTES = 2 * 1024 * 1024          # force >=2 grid steps above this (v7x 2xTC)


def _scaled_leaky_relu_kernel(x_ref, o_ref, *, pos, neg):
    x = x_ref[...]
    # Weak-typed Python floats keep the math in the input dtype (bf16 stays bf16).
    o_ref[...] = jnp.where(x >= 0, x * pos, x * neg).astype(o_ref.dtype)


def _round_up(v, m):
    return ((v + m - 1) // m) * m


def scaled_leaky_relu(x, negative_slope=0.2):
    """leaky_relu(x, negative_slope) * sqrt(2) via Pallas.

    Accepts any rank / floating dtype; shape and dtype are preserved.
    """
    orig_shape = x.shape
    n = x.size
    if n == 0:
        return x

    pos = float(SQRT2)
    neg = float(negative_slope * SQRT2)

    flat = x.reshape(-1)

    # Lane width: largest candidate dividing n -> zero-copy 2-D view.
    lane = None
    for w in _LANE_CHOICES:
        if n % w == 0:
            lane = w
            break
    if lane is None:
        # Truly ragged count (n % 128 != 0): pad the sub-128 tail.  This is the
        # only path that pays an extra HBM round trip (pad + slice).
        # TODO(synk): handle the <128-element tail with a masked pltpu.store to
        # drop the pad/slice round trip entirely.
        lane = 128
        pad = (-n) % lane
        flat = jnp.pad(flat, (0, pad))
    else:
        pad = 0

    rows = flat.size // lane
    x2d = flat.reshape(rows, lane)

    itemsize = jnp.dtype(x.dtype).itemsize
    total_bytes = rows * lane * itemsize

    # Byte-budgeted row tile (~8 MiB per block), aligned for sublane packing.
    tile_r = _TARGET_BLOCK_BYTES // (lane * itemsize)
    tile_r = max(_ROW_ALIGN, (tile_r // _ROW_ALIGN) * _ROW_ALIGN)
    # Medium/large inputs: at least 2 grid steps so v7x's two TensorCores both
    # drive HBM on the "parallel" axis.
    if total_bytes > _MIN_SPLIT_BYTES:
        tile_r = min(tile_r, _round_up(pl.cdiv(rows, 2), _ROW_ALIGN))
    # Small inputs: a single whole-array block (block == full dims is always legal).
    tile_r = min(tile_r, rows)

    grid = (pl.cdiv(rows, tile_r),)

    out2d = pl.pallas_call(
        functools.partial(_scaled_leaky_relu_kernel, pos=pos, neg=neg),
        out_shape=jax.ShapeDtypeStruct((rows, lane), x.dtype),
        grid=grid,
        in_specs=[pl.BlockSpec((tile_r, lane), lambda i: (i, 0))],
        out_specs=pl.BlockSpec((tile_r, lane), lambda i: (i, 0)),
        compiler_params=pltpu.CompilerParams(
            dimension_semantics=("parallel",),
            vmem_limit_bytes=_VMEM_LIMIT_BYTES,
        ),
    )(x2d)

    out_flat = out2d.reshape(-1)
    if pad:
        out_flat = out_flat[:n]
    return out_flat.reshape(orig_shape)


if __name__ == "__main__":
    key = jax.random.PRNGKey(0)

    def ref_fn(v, ns=0.2):
        return jnp.where(v >= 0, v, ns * v) * SQRT2

    # Primary check: NCHW input matching the PyTorch module's typical use.
    x = jax.random.normal(key, (2, 4, 16, 16), dtype=jnp.float32)
    out = jax.block_until_ready(scaled_leaky_relu(x, negative_slope=0.2))
    assert out.shape == x.shape and out.dtype == x.dtype
    assert jnp.allclose(out, ref_fn(x), atol=1e-6, rtol=1e-6)

    k1, k2, k3 = jax.random.split(key, 3)

    # Ragged element count (2805, not a multiple of 128) -> padding fallback.
    x2 = jax.random.normal(k1, (3, 5, 17, 11), dtype=jnp.float32)
    out2 = jax.block_until_ready(scaled_leaky_relu(x2))
    assert out2.shape == x2.shape
    assert jnp.allclose(out2, ref_fn(x2), atol=1e-6, rtol=1e-6)

    # f32 ~3 MiB input -> forced 2-step grid with a partial last row block.
    x3 = jax.random.normal(k2, (2, 16, 160, 160), dtype=jnp.float32)
    out3 = jax.block_until_ready(scaled_leaky_relu(x3))
    assert out3.shape == x3.shape
    assert jnp.allclose(out3, ref_fn(x3), atol=1e-6, rtol=1e-6)

    # bf16 input -> byte-budgeted tile, math stays in bf16.
    x4 = jax.random.normal(k3, (2, 8, 64, 64), dtype=jnp.bfloat16)
    out4 = jax.block_until_ready(scaled_leaky_relu(x4))
    assert out4.shape == x4.shape and out4.dtype == jnp.bfloat16
    assert jnp.allclose(out4.astype(jnp.float32),
                        ref_fn(x4.astype(jnp.float32)),
                        atol=2e-2, rtol=2e-2)

    print("KERNEL_OK")
</pallas_src>

<mosaic_0001>
module attributes {stable_mosaic.version = 11 : i64} {
  func.func @_scaled_leaky_relu_kernel(%arg0: i32, %arg1: memref<2x1024xf32, #tpu.memory_space<vmem>>, %arg2: memref<2x1024xf32, #tpu.memory_space<vmem>>) attributes {dimension_semantics = [#tpu.dimension_semantics<parallel>], iteration_bounds = array<i64: 1>, scalar_prefetch = 0 : i64, scratch_operands = 0 : i64, tpu.core_type = #tpu.core_type<tc>, window_params = [{transform_indices = @transform_0, window_bounds = array<i64: 2, 1024>}, {transform_indices = @transform_1, window_bounds = array<i64: 2, 1024>}]} {
    %c0 = arith.constant 0 : index
    %c0_0 = arith.constant 0 : index
    %0 = vector.load %arg1[%c0, %c0_0] : memref<2x1024xf32, #tpu.memory_space<vmem>>, vector<2x1024xf32>
    %cst = arith.constant 0.000000e+00 : f32
    %1 = vector.broadcast %cst : f32 to vector<2x1024xf32>
    %2 = arith.cmpf oge, %0, %1 : vector<2x1024xf32>
    %cst_1 = arith.constant 1.41421354 : f32
    %3 = vector.broadcast %cst_1 : f32 to vector<2x1024xf32>
    %4 = arith.mulf %0, %3 : vector<2x1024xf32>
    %cst_2 = arith.constant 0.282842726 : f32
    %5 = vector.broadcast %cst_2 : f32 to vector<2x1024xf32>
    %6 = arith.mulf %0, %5 : vector<2x1024xf32>
    %7 = arith.select %2, %4, %6 : vector<2x1024xi1>, vector<2x1024xf32>
    %c0_3 = arith.constant 0 : index
    %c0_4 = arith.constant 0 : index
    %8 = vector.load %arg2[%c0_3, %c0_4] : memref<2x1024xf32, #tpu.memory_space<vmem>>, vector<2x1024xf32>
    tpu.vector_store %arg2[%c0_3, %c0_4], %7 {strides = array<i32>} : memref<2x1024xf32, #tpu.memory_space<vmem>>, vector<2x1024xf32>,
    return
  }
  func.func @transform_0(%arg0: i32) -> (i32, i32) {
    %c0_i32 = arith.constant 0 : i32
    %c0_i32_0 = arith.constant 0 : i32
    return %arg0, %c0_i32 : i32, i32
  }
  func.func @transform_1(%arg0: i32) -> (i32, i32) {
    %c0_i32 = arith.constant 0 : i32
    %c0_i32_0 = arith.constant 0 : i32
    return %arg0, %c0_i32 : i32, i32
  }
}

</mosaic_0001>

<bundles_post_ra>
// kernel: tpu_custom_call.1
= control target key start
LH: loop header
LB: loop body
LE: loop exit
PB: predicated region body
PF: predicated region fallthrough
CT: control target
= control target key end

     0   :  { %6 = vsyncpa [#allocation3], 0  ;;  %s124_s0 = inlined_call_operand.hbm [shape: f32[2,1024], index: 0, kind: input, shape index: {}]   ;;  %s125_s1 = inlined_call_operand.hbm [shape: f32[2,1024], index: 1, kind: output, shape index: {}]  }
   0x1   :  { %7 = vsyncpa [#allocation4], 0  ;;  %s13_s8 = sshll.u32 %s124_s0, 4  ;;  %s106_s9 = smov [#allocation2]   ;;  %s14_s8 = int_to_ptr.hbm [resolvable:$true] %s13_s8 }
   0x2   :  { %s15_s10 = sshll.u32 %s106_s9, 4  ;;  %s16_s10 = int_to_ptr.vmem [resolvable:$true] %s15_s10 }
   0x3   :  { %18 = dma.hbm_to_vmem [thread:$0]  %s14_s8, 256, %s16_s10, [#allocation3]  }
   0x4   :  { %102 = dma.done.wait [#allocation3], 256  }
   0x5   :  { %103 = vsyncadd [#allocation3], 4294967040  ;;  %v23_v0 = vld [vmem:[#allocation2] sm:$0xff]  ;;  %v24_v1 = vld [vmem:[#allocation2 + $0x8] sm:$0xff]  ;;  %s107_s11 = smov [#allocation5]   ;;  %s42_s15 = sshll.u32 %s125_s1, 4  ;;  %s43_s15 = int_to_ptr.hbm [resolvable:$true] %s42_s15 }
   0x6   :  { %s40_s12 = sshll.u32 %s107_s11, 4  ;;  %vm25_vm0 = vcmp.ge.f32.partialorder %v23_v0, 0.0  ;;  %v27_v2 = vmul.f32 1.4142135, %v23_v0  ;;  %v29_v3 = vmul.f32 0.28284273, %v23_v0  ;;  %s41_s12 = int_to_ptr.vmem [resolvable:$true] %s40_s12 }
   0x7   :  { %vm26_vm1 = vcmp.ge.f32.partialorder %v24_v1, 0.0  ;;  %v28_v4 = vmul.f32 1.4142135, %v24_v1  ;;  %v30_v5 = vmul.f32 0.28284273, %v24_v1 }
   0x8   :  { %v31_v6 = vsel %vm25_vm0, %v27_v2, %v29_v3 }
   0x9   :  { %33 = vst [vmem:[#allocation5] sm:$0xff] %v31_v6  ;;  %v32_v7 = vsel %vm26_vm1, %v28_v4, %v30_v5 }
   0xa   :  { %34 = vst [vmem:[#allocation5 + $0x8] sm:$0xff] %v32_v7 }
   0xb   :  { %45 = dma.vmem_to_hbm [thread:$0]  %s41_s12, 256, %s43_s15, [#allocation4]  }
   0xc   :  { %104 = dma.done.wait [#allocation4], 256  }
   0xd   :  { %105 = vsyncadd [#allocation4], 4294967040 }
   0xe   :  { %50 = vsyncpa [#allocation3], 1 }
   0xf   :  { %51 = vsyncpa [#allocation4], 1 }

</bundles_post_ra>
